<compile_context>
chip_gen: v5e
topology: v5e:2x2
jax: 0.10.0
libtpu: 0.0.40
codegen_flags: <defaults>
</compile_context>

<pallas_src>
import jax
import jax.numpy as jnp
from jax import lax
from jax.experimental import pallas as pl
from jax.experimental.pallas import tpu as pltpu


def _vmem_capacity_bytes():
    try:
        return int(pltpu.get_tpu_info().vmem_capacity_bytes)
    except Exception:
        return 64 * 1024 * 1024  # conservative default (v7x-class)


def _tiling_params(hw, c, itemsize):
    """Generation-aware spatial tile size and scoped-VMEM limit.

    Both passes are pure HBM streaming, so use the largest lane-multiple tile
    that keeps the double-buffered in-flight footprint (~4x block for pass 2)
    comfortably inside the scoped-VMEM budget for the detected chip.
    """
    vmem = _vmem_capacity_bytes()
    if vmem >= 128 * 1024 * 1024:          # v5e / v6e: 128 MiB physical VMEM
        target_bytes = 8 * 1024 * 1024
        vmem_limit = 64 * 1024 * 1024
    else:                                   # v7x-class: 64 MiB physical VMEM
        target_bytes = 5 * 1024 * 1024
        vmem_limit = 40 * 1024 * 1024
    cap = max(128, (target_bytes // max(1, c * itemsize)) // 128 * 128)
    if hw <= cap:
        tile = hw          # single full-extent spatial block (always legal)
    else:
        tile = cap         # multiple of 128; tail lanes masked in pass 1
    return tile, vmem_limit


def ca_layer(x_nchw, w1, b1, w2, b2, *, spatial_tile=None):
    """Channel attention.

    x_nchw: (N, C, H, W); w1: (C//r, C); b1: (C//r,); w2: (C, C//r); b2: (C,).
    `spatial_tile` overrides the auto-chosen spatial tile (testing only).
    """
    N, C, H, W = x_nchw.shape
    Cr = w1.shape[0]
    HW = H * W

    # Free view of NCHW memory: (N, C, HW).  No transpose glue.
    x = x_nchw.reshape(N, C, HW)

    T, vmem_limit = _tiling_params(HW, C, x.dtype.itemsize)
    if spatial_tile is not None:
        T = int(spatial_tile)
    n_t = pl.cdiv(HW, T)
    needs_mask = (HW % T) != 0
    inv_hw = 1.0 / float(HW)

    # MLP params laid out so both contractions in the finalize are plain
    # broadcast-multiply + reduce (no in-kernel transposes / matmuls).
    w1t = w1.astype(jnp.float32).T                 # (C, Cr): contract sublanes
    b1r = b1.astype(jnp.float32).reshape(1, Cr)    # (1, Cr)
    w2f = w2.astype(jnp.float32)                   # (C, Cr): contract lanes
    b2r = b2.astype(jnp.float32).reshape(C, 1)     # (C, 1)

    # ---------- pass 1: spatial mean + squeeze-excite MLP -> gate (N, C, 1) --
    def gap_gate_kernel(x_ref, w1t_ref, b1_ref, w2_ref, b2_ref, gate_ref, acc_ref):
        j = pl.program_id(1)

        @pl.when(j == 0)
        def _init():
            acc_ref[...] = jnp.zeros_like(acc_ref)

        tile = x_ref[0]                                        # (C, T)
        if needs_mask:
            lane = lax.broadcasted_iota(jnp.int32, (C, T), 1)
            tile = jnp.where(lane < (HW - j * T), tile, 0)
        # Accumulate in f32 without materializing an f32 copy of the tile.
        acc_ref[...] += jnp.sum(tile, axis=-1, keepdims=True, dtype=jnp.float32)

        @pl.when(j == pl.num_programs(1) - 1)
        def _finalize():
            m = acc_ref[...] * inv_hw                          # (C, 1) f32
            # z = relu(W1 @ m + b1): contract over C on sublanes.
            z = jnp.maximum(
                jnp.sum(w1t_ref[...] * m, axis=0, keepdims=True) + b1_ref[...],
                0.0)                                           # (1, Cr)
            # g = sigmoid(W2 @ z + b2): contract over Cr on lanes.
            g = jax.nn.sigmoid(
                jnp.sum(w2_ref[...] * z, axis=-1, keepdims=True) + b2_ref[...])
            gate_ref[0] = g.astype(gate_ref.dtype)             # (C, 1)

    gate = pl.pallas_call(
        gap_gate_kernel,
        out_shape=jax.ShapeDtypeStruct((N, C, 1), x.dtype),
        grid_spec=pltpu.PrefetchScalarGridSpec(
            num_scalar_prefetch=0,
            grid=(N, n_t),
            in_specs=[
                pl.BlockSpec((1, C, T), lambda n, j: (n, 0, j)),
                pl.BlockSpec((C, Cr), lambda n, j: (0, 0)),
                pl.BlockSpec((1, Cr), lambda n, j: (0, 0)),
                pl.BlockSpec((C, Cr), lambda n, j: (0, 0)),
                pl.BlockSpec((C, 1), lambda n, j: (0, 0)),
            ],
            out_specs=pl.BlockSpec((1, C, 1), lambda n, j: (n, 0, 0)),
            scratch_shapes=[pltpu.VMEM((C, 1), jnp.float32)],
        ),
        compiler_params=pltpu.CompilerParams(
            dimension_semantics=("parallel", "arbitrary"),
            vmem_limit_bytes=vmem_limit),
    )(x, w1t, b1r, w2f, b2r)

    # ---------------- pass 2: lane-dense broadcast multiply -----------------
    def scale_kernel(x_ref, g_ref, o_ref):
        # (C, T) * (C, 1) in the native dtype; per-channel lane broadcast.
        o_ref[0] = (x_ref[0] * g_ref[0]).astype(o_ref.dtype)

    out = pl.pallas_call(
        scale_kernel,
        out_shape=jax.ShapeDtypeStruct((N, C, HW), x.dtype),
        grid_spec=pltpu.PrefetchScalarGridSpec(
            num_scalar_prefetch=0,
            grid=(N, n_t),
            in_specs=[
                pl.BlockSpec((1, C, T), lambda n, j: (n, 0, j)),
                pl.BlockSpec((1, C, 1), lambda n, j: (n, 0, 0)),
            ],
            out_specs=pl.BlockSpec((1, C, T), lambda n, j: (n, 0, j)),
        ),
        compiler_params=pltpu.CompilerParams(
            dimension_semantics=("parallel", "parallel"),
            vmem_limit_bytes=vmem_limit),
    )(x, gate)

    # Free view back to NCHW.
    return out.reshape(N, C, H, W)


def ca_layer_ref(x_nchw, w1, b1, w2, b2):
    """Pure-JAX reference mirroring the PyTorch module."""
    y = jnp.mean(x_nchw, axis=(2, 3))                          # (N, C)
    y = jnp.maximum(y @ w1.T + b1, 0.0)                        # (N, C//r)
    y = jax.nn.sigmoid(y @ w2.T + b2)                          # (N, C)
    return x_nchw * y[:, :, None, None]


if __name__ == "__main__":
    N, C, H, W = 2, 32, 16, 16
    reduction = 16
    mid = C // reduction

    key = jax.random.PRNGKey(0)
    kx, k1, k2, k3, k4, kx2 = jax.random.split(key, 6)

    x = jax.random.normal(kx, (N, C, H, W), dtype=jnp.float32)
    # deterministic synthetic parameters (Conv2d 1x1 weights squeezed to 2D)
    w1 = jax.random.normal(k1, (mid, C), dtype=jnp.float32) * 0.1
    b1 = jax.random.normal(k2, (mid,), dtype=jnp.float32) * 0.1
    w2 = jax.random.normal(k3, (C, mid), dtype=jnp.float32) * 0.1
    b2 = jax.random.normal(k4, (C,), dtype=jnp.float32) * 0.1

    out = jax.block_until_ready(ca_layer(x, w1, b1, w2, b2))
    ref = ca_layer_ref(x, w1, b1, w2, b2)
    assert out.shape == x.shape and out.dtype == x.dtype
    assert jnp.allclose(out, ref, atol=1e-5, rtol=1e-5), "mismatch vs reference"

    # Non-128-divisible spatial size with a forced small tile: exercises the
    # pl.cdiv grid + masked-tail path of pass 1 and partial stores of pass 2.
    x2 = jax.random.normal(kx2, (1, C, 16, 10), dtype=jnp.float32)  # HW = 160
    out2 = jax.block_until_ready(ca_layer(x2, w1, b1, w2, b2, spatial_tile=128))
    ref2 = ca_layer_ref(x2, w1, b1, w2, b2)
    assert jnp.allclose(out2, ref2, atol=1e-5, rtol=1e-5), "tail-mask mismatch"

    print("KERNEL_OK")
</pallas_src>

<mosaic_0001>
module attributes {stable_mosaic.version = 11 : i64} {
  func.func @gap_gate_kernel(%arg0: i32, %arg1: i32, %arg2: memref<1x32x256xf32, #tpu.memory_space<vmem>>, %arg3: memref<32x2xf32, #tpu.memory_space<vmem>>, %arg4: memref<1x2xf32, #tpu.memory_space<vmem>>, %arg5: memref<32x2xf32, #tpu.memory_space<vmem>>, %arg6: memref<32x1xf32, #tpu.memory_space<vmem>>, %arg7: memref<1x32x1xf32, #tpu.memory_space<vmem>>, %arg8: memref<32x1xf32, #tpu.memory_space<vmem>>) attributes {dimension_semantics = [#tpu.dimension_semantics<parallel>, #tpu.dimension_semantics<arbitrary>], iteration_bounds = array<i64: 2, 1>, scalar_prefetch = 0 : i64, scratch_operands = 1 : i64, tpu.core_type = #tpu.core_type<tc>, window_params = [{transform_indices = @transform_0, window_bounds = array<i64: 1, 32, 256>}, {pipeline_mode = #tpu.pipeline_mode<synchronous>, transform_indices = @transform_1, window_bounds = array<i64: 32, 2>}, {pipeline_mode = #tpu.pipeline_mode<synchronous>, transform_indices = @transform_2, window_bounds = array<i64: 1, 2>}, {pipeline_mode = #tpu.pipeline_mode<synchronous>, transform_indices = @transform_3, window_bounds = array<i64: 32, 2>}, {pipeline_mode = #tpu.pipeline_mode<synchronous>, transform_indices = @transform_4, window_bounds = array<i64: 32, 1>}, {transform_indices = @transform_5, window_bounds = array<i64: 1, 32, 1>}]} {
    %c0_i32 = arith.constant 0 : i32
    %0 = arith.cmpi eq, %arg1, %c0_i32 : i32
    %1 = arith.extui %0 : i1 to i32
    %c0_i32_0 = arith.constant 0 : i32
    %2 = arith.cmpi ne, %1, %c0_i32_0 : i32
    scf.if %2 {
      %cst_9 = arith.constant 0.000000e+00 : f32
      %13 = vector.broadcast %cst_9 : f32 to vector<32x1xf32>
      %c0_10 = arith.constant 0 : index
      %c0_11 = arith.constant 0 : index
      %14 = vector.load %arg8[%c0_10, %c0_11] : memref<32x1xf32, #tpu.memory_space<vmem>>, vector<32x1xf32>
      tpu.vector_store %arg8[%c0_10, %c0_11], %13 {strides = array<i32>} : memref<32x1xf32, #tpu.memory_space<vmem>>, vector<32x1xf32>,
    } else {
    }
    %c0 = arith.constant 0 : index
    %c0_1 = arith.constant 0 : index
    %c0_2 = arith.constant 0 : index
    %3 = vector.load %arg2[%c0, %c0_1, %c0_2] : memref<1x32x256xf32, #tpu.memory_space<vmem>>, vector<1x32x256xf32>
    %4 = vector.shape_cast %3 : vector<1x32x256xf32> to vector<32x256xf32>
    %c0_3 = arith.constant 0 : index
    %c0_4 = arith.constant 0 : index
    %5 = vector.load %arg8[%c0_3, %c0_4] : memref<32x1xf32, #tpu.memory_space<vmem>>, vector<32x1xf32>
    %cst = arith.constant dense<0.000000e+00> : vector<32xf32>
    %6 = vector.multi_reduction <add>, %4, %cst [1] : vector<32x256xf32> to vector<32xf32>
    %7 = vector.shape_cast %6 : vector<32xf32> to vector<32x1xf32>
    %8 = arith.addf %5, %7 : vector<32x1xf32>
    %c0_5 = arith.constant 0 : index
    %c0_6 = arith.constant 0 : index
    %9 = vector.load %arg8[%c0_5, %c0_6] : memref<32x1xf32, #tpu.memory_space<vmem>>, vector<32x1xf32>
    tpu.vector_store %arg8[%c0_5, %c0_6], %8 {strides = array<i32>} : memref<32x1xf32, #tpu.memory_space<vmem>>, vector<32x1xf32>,
    %c0_i32_7 = arith.constant 0 : i32
    %10 = arith.cmpi eq, %arg1, %c0_i32_7 : i32
    %11 = arith.extui %10 : i1 to i32
    %c0_i32_8 = arith.constant 0 : i32
    %12 = arith.cmpi ne, %11, %c0_i32_8 : i32
    scf.if %12 {
      %c0_9 = arith.constant 0 : index
      %c0_10 = arith.constant 0 : index
      %13 = vector.load %arg8[%c0_9, %c0_10] : memref<32x1xf32, #tpu.memory_space<vmem>>, vector<32x1xf32>
      %cst_11 = arith.constant 3.906250e-03 : f32
      %14 = vector.broadcast %cst_11 : f32 to vector<32x1xf32>
      %15 = arith.mulf %13, %14 : vector<32x1xf32>
      %c0_12 = arith.constant 0 : index
      %c0_13 = arith.constant 0 : index
      %16 = vector.load %arg3[%c0_12, %c0_13] : memref<32x2xf32, #tpu.memory_space<vmem>>, vector<32x2xf32>
      %17 = vector.broadcast %15 : vector<32x1xf32> to vector<32x2xf32>
      %18 = arith.mulf %16, %17 : vector<32x2xf32>
      %cst_14 = arith.constant dense<0.000000e+00> : vector<2xf32>
      %19 = vector.multi_reduction <add>, %18, %cst_14 [0] : vector<32x2xf32> to vector<2xf32>
      %20 = vector.shape_cast %19 : vector<2xf32> to vector<1x2xf32>
      %c0_15 = arith.constant 0 : index
      %c0_16 = arith.constant 0 : index
      %21 = vector.load %arg4[%c0_15, %c0_16] : memref<1x2xf32, #tpu.memory_space<vmem>>, vector<1x2xf32>
      %22 = arith.addf %20, %21 : vector<1x2xf32>
      %cst_17 = arith.constant 0.000000e+00 : f32
      %23 = vector.broadcast %cst_17 : f32 to vector<1x2xf32>
      %24 = arith.maximumf %22, %23 : vector<1x2xf32>
      %c0_18 = arith.constant 0 : index
      %c0_19 = arith.constant 0 : index
      %25 = vector.load %arg5[%c0_18, %c0_19] : memref<32x2xf32, #tpu.memory_space<vmem>>, vector<32x2xf32>
      %26 = vector.broadcast %24 : vector<1x2xf32> to vector<32x2xf32>
      %27 = arith.mulf %25, %26 : vector<32x2xf32>
      %cst_20 = arith.constant dense<0.000000e+00> : vector<32xf32>
      %28 = vector.multi_reduction <add>, %27, %cst_20 [1] : vector<32x2xf32> to vector<32xf32>
      %29 = vector.shape_cast %28 : vector<32xf32> to vector<32x1xf32>
      %c0_21 = arith.constant 0 : index
      %c0_22 = arith.constant 0 : index
      %30 = vector.load %arg6[%c0_21, %c0_22] : memref<32x1xf32, #tpu.memory_space<vmem>>, vector<32x1xf32>
      %31 = arith.addf %29, %30 : vector<32x1xf32>
      %32 = arith.negf %31 : vector<32x1xf32>
      %33 = math.exp %32 : vector<32x1xf32>
      %cst_23 = arith.constant 1.000000e+00 : f32
      %34 = vector.broadcast %cst_23 : f32 to vector<32x1xf32>
      %35 = arith.addf %34, %33 : vector<32x1xf32>
      %36 = arith.divf %34, %35 : vector<32x1xf32>
      %c0_24 = arith.constant 0 : index
      %c0_25 = arith.constant 0 : index
      %c0_26 = arith.constant 0 : index
      %37 = vector.load %arg7[%c0_24, %c0_25, %c0_26] : memref<1x32x1xf32, #tpu.memory_space<vmem>>, vector<1x32x1xf32>
      %38 = vector.shape_cast %37 : vector<1x32x1xf32> to vector<32x1xf32>
      %39 = vector.shape_cast %36 : vector<32x1xf32> to vector<1x32x1xf32>
      tpu.vector_store %arg7[%c0_24, %c0_25, %c0_26], %39 {strides = array<i32>} : memref<1x32x1xf32, #tpu.memory_space<vmem>>, vector<1x32x1xf32>,
    } else {
    }
    return
  }
  func.func @transform_0(%arg0: i32, %arg1: i32) -> (i32, i32, i32) {
    %c0_i32 = arith.constant 0 : i32
    %c0_i32_0 = arith.constant 0 : i32
    return %arg0, %c0_i32, %arg1 : i32, i32, i32
  }
  func.func @transform_1(%arg0: i32, %arg1: i32) -> (i32, i32) {
    %c0_i32 = arith.constant 0 : i32
    %c0_i32_0 = arith.constant 0 : i32
    %c0_i32_1 = arith.constant 0 : i32
    return %c0_i32, %c0_i32_0 : i32, i32
  }
  func.func @transform_2(%arg0: i32, %arg1: i32) -> (i32, i32) {
    %c0_i32 = arith.constant 0 : i32
    %c0_i32_0 = arith.constant 0 : i32
    %c0_i32_1 = arith.constant 0 : i32
    return %c0_i32, %c0_i32_0 : i32, i32
  }
  func.func @transform_3(%arg0: i32, %arg1: i32) -> (i32, i32) {
    %c0_i32 = arith.constant 0 : i32
    %c0_i32_0 = arith.constant 0 : i32
    %c0_i32_1 = arith.constant 0 : i32
    return %c0_i32, %c0_i32_0 : i32, i32
  }
  func.func @transform_4(%arg0: i32, %arg1: i32) -> (i32, i32) {
    %c0_i32 = arith.constant 0 : i32
    %c0_i32_0 = arith.constant 0 : i32
    %c0_i32_1 = arith.constant 0 : i32
    return %c0_i32, %c0_i32_0 : i32, i32
  }
  func.func @transform_5(%arg0: i32, %arg1: i32) -> (i32, i32, i32) {
    %c0_i32 = arith.constant 0 : i32
    %c0_i32_0 = arith.constant 0 : i32
    %c0_i32_1 = arith.constant 0 : i32
    return %arg0, %c0_i32, %c0_i32_0 : i32, i32, i32
  }
}

</mosaic_0001>

<bundles_post_ra>
// kernel: tpu_custom_call.1
= control target key start
LH: loop header
LB: loop body
LE: loop exit
PB: predicated region body
PF: predicated region fallthrough
CT: control target
= control target key end

     0   :  { %10 = vsyncpa [#allocation4], 0  ;;  %s915_s0 = inlined_call_operand.hbm [shape: f32[2,32,256], index: 0, kind: input, shape index: {}]   ;;  %s916_s1 = inlined_call_operand.vmem [shape: f32[32,2], index: 1, kind: input, shape index: {}]   ;;  %s917_s2 = inlined_call_operand.vmem [shape: f32[1,2], index: 2, kind: input, shape index: {}]   ;;  %s918_s3 = inlined_call_operand.vmem [shape: f32[32,2], index: 3, kind: input, shape index: {}]   ;;  %s919_s4 = inlined_call_operand.vmem [shape: f32[32,1], index: 4, kind: input, shape index: {}]   ;;  %s920_s5 = inlined_call_operand.vmem [shape: f32[2,32,1], index: 5, kind: output, shape index: {}]  }
   0x1   :  { %12 = vsyncpa [#allocation4 + $0x1], 0  ;;  %s762_s18 = smov 0   ;;  %s764_s19 = smov 0  }
   0x2   :  { %s766_s20 = smov 0   ;;  %s768_s21 = smov 0  }
   0x3   :  { %s770_s22 = smov 0   ;;  %s772_s23 = smov 0  }
   0x4 LB: > { %s549_s24 = sadd.s32 4294967295, %s726_s23   ;;  %s30_s25 = sadd.s32 1, %s722_s22  ;;  %s726_s23 = sphi %s772_s23, %s18_s23   ;;  %s722_s22 = sphi %s770_s22, %s927_s22   ;;  %s718_s21 = sphi %s768_s21, %s926_s21   ;;  %s714_s20 = sphi %s766_s20, %s925_s20   ;;  %s710_s19 = sphi %s764_s19, %s924_s19   ;;  %s706_s18 = sphi %s762_s18, %s923_s18  }
   0x5   : > { %p32_p0 = scmp.ge.s32.totalorder %s30_s25, 2  ;;  %s39_s26 = sadd.s32 1, %s714_s20 }
   0x6   : > { %p46_p1 = scmp.ne.s32.totalorder %s714_s20, %s710_s19  ;;  %p47_p2 = scmp.eq.s32.totalorder %s726_s23, 0 }
   0x7   : > { %s929_s25 = smov (%p32_p0, %s30_s25), 0  ;;  %p52_p4 = scmp.ne.s32.totalorder %s710_s19, %s706_s18 }
   0x8   : > { %p798_p3 = por %p47_p2, %p46_p1  ;;  %s34_s28 = ssub.s32 %s722_s22, %s929_s25 }
   0x9   : > { %p53_p5 = scmp.eq.s32.totalorder %s549_s24, 0  ;;  %p37_p6 = scmp.eq.s32.totalorder %s34_s28, 0 }
   0xa   : > { %p574_p8 = scmp.lt.s32.totalorder %s726_s23, 2  ;;  %s198_s6 = sand.u32 1, %s714_s20  }
   0xb   : > { %p805_p7 = por %p53_p5, %p52_p4  ;;  %s566_s7 = sshll.u32 %s722_s22, 6 }
   0xc   : > { %s811_s30 = scalar_select %p37_p6, %s714_s20, %s39_s26  }
   0xd   : > { %s553_s8 = sshll.u32 %s198_s6, 6  ;;  %s209_s11 = scalar_lea.hbm %s915_s0, %s566_s7 }
   0xe   : > { %s210_s12 = sshll.u32 %s209_s11, 4  ;;  %s202_s13 = scalar_lea.vmem [#allocation3], %s553_s8  ;;  %s211_s12 = int_to_ptr.hbm [resolvable:$true] %s210_s12 }
   0xf   : > { %s212_s14 = sshll.u32 %s202_s13, 4  ;;  %p571_p9 = pnand %p574_p8, %p798_p3  ;;  %s213_s14 = int_to_ptr.vmem [resolvable:$true] %s212_s14 }
  0x10   : > { %p556_p10 = scmp.ge.s32.totalorder %s726_s23, 1  ;;  %p220_p11 = scmp.lt.s32.totalorder %s726_s23, 3 }
  0x11   : > { %s199_s15 = scalar_lea.sflag [#allocation4], %s198_s6  ;;  %s728_s16 = smov 256  }
  0x12   : > { %s729_s17 = smov 16   ;;  %p221_p12 = pnand %p556_p10, %p220_p11 }
  0x13   : > { %573 = dma.hbm_to_vmem [thread:$0]  (!%p571_p9), %s211_s12, 1024, %s213_s14, %s199_s15, %s728_s16, %s728_s16, %s729_s17  }
  0x14   : > { %224 = sbr.rel (%p221_p12) target bundleno = 464 (0x1d0), region = 40  ;;  %s226_s18 = sand.u32 (!%p221_p12), 1, %s710_s19  }
  0x15   : > { %s557_s24 = sshll.u32 (!%p221_p12), %s226_s18, 6  ;;  %s227_s26 = scalar_lea.sflag (!%p221_p12), [#allocation4], %s226_s18 }
  0x16   : > { %s230_s28 = scalar_lea.vmem (!%p221_p12), [#allocation3], %s557_s24 }
  0x19   : > { %701 = dma.done.wait (%p805_p7), %s227_s26, 1024  }
  0x1a   : > { %703 = vsyncadd (%p805_p7), %s227_s26, 4294966272  ;;  %vm268_vm0 = vcmask 7168   ;;  %v730_v0 = vmov 0.0   ;;  %v277_v1 = vld [vmem:[%s230_s28 + $0x20] sm:$0xff]  ;;  %v278_v2 = vld [vmem:[%s230_s28 + $0x28] sm:$0xff]  ;;  %v731_v13 = vmov 0  }
  0x1b   : > { %271 = vst.msk [vmem:[#allocation2 + $0x10] sm:$0xff] %vm268_vm0, %v730_v0  ;;  %v291_v3 = vadd.f32 %v278_v2, %v277_v1  ;;  %v273_v4 = vld [vmem:[%s230_s28] sm:$0xff]  ;;  %v274_v5 = vld [vmem:[%s230_s28 + $0x8] sm:$0xff]  ;;  %v279_v7 = vld [vmem:[%s230_s28 + $0x30] sm:$0xff]  ;;  %628 = vset.pattern.permute.xlu0 %v731_v13  ;;  %629 = vset.pattern.permute.xlu1 %v731_v13  ;;  %vm345_vm1 = vcmask 15360   ;;  %p259_p13 = scmp.lt.s32.totalorder %s718_s21, 1 }
  0x1c   : > { %269 = vst.msk [vmem:[#allocation2] sm:$0xff] %vm268_vm0, %v730_v0  ;;  %v285_v6 = vadd.f32 %v274_v5, %v273_v4  ;;  %v280_v8 = vld [vmem:[%s230_s28 + $0x38] sm:$0xff]  ;;  %v275_v9 = vld [vmem:[%s230_s28 + $0x10] sm:$0xff]  ;;  %627 = vset.pattern.permute.xlu2 %v731_v13  ;;  %v317_v35 = vld [vmem:[%s916_s1] sm:$0xff] }
  0x1d   : > { %270 = vst.msk [vmem:[#allocation2 + $0x8] sm:$0xff] %vm268_vm0, %v730_v0  ;;  %292 = vadd.xlane.f32.xlu1 %v291_v3  ;;  %v276_v10 = vld [vmem:[%s230_s28 + $0x18] sm:$0xff]  ;;  %v294_v11 = vadd.f32 %v280_v8, %v279_v7  ;;  %v318_v36 = vld [vmem:[%s916_s1 + $0x8] sm:$0xff]  ;;  %v319_v38 = vld [vmem:[%s916_s1 + $0x10] sm:$0xff]  ;;  %s931_s21 = smov (!%p259_p13, %s718_s21), 1 }
  0x1e   : > { %272 = vst.msk [vmem:[#allocation2 + $0x18] sm:$0xff] %vm268_vm0, %v730_v0  ;;  %286 = vadd.xlane.f32.xlu0 %v285_v6  ;;  %v288_v12 = vadd.f32 %v276_v10, %v275_v9  ;;  %v320_v45 = vld [vmem:[%s916_s1 + $0x18] sm:$0xff]  ;;  %v359_v58 = vld [vmem:[%s917_s2] sm:$0x1]  ;;  %v364_v62 = vld [vmem:[%s918_s3 + $0x10] sm:$0xff]  ;;  %s567_s12 = sshll.u32 %s931_s21, 5 }
  0x1f   : > { %v363_v63 = vld [vmem:[%s918_s3 + $0x8] sm:$0xff]  ;;  %v362_v0 = vld [vmem:[%s918_s3] sm:$0xff]  ;;  %v365_v8 = vld [vmem:[%s918_s3 + $0x18] sm:$0xff]  ;;  %s887_s15 = scalar_lea.vmem %s920_s5, %s567_s12 }
  0x20   : > { %v383_v13 = vld [vmem:[%s919_s4] sm:$0xff] }
  0x22   : > { %v283_v14 = vld [vmem:[#allocation2 + $0x10] sm:$0xff] }
  0x23   : > { %v281_v15 = vld [vmem:[#allocation2] sm:$0xff] }
  0x24   : > { %v282_v21 = vld [vmem:[#allocation2 + $0x8] sm:$0xff] }
  0x25   : > { %295 = vadd.xlane.f32.xlu1 %v294_v11  ;;  %v284_v20 = vld [vmem:[#allocation2 + $0x18] sm:$0xff]  ;;  %v385_v11 = vld [vmem:[%s919_s4 + $0x10] sm:$0xff] }
  0x26   : > { %289 = vadd.xlane.f32.xlu0 %v288_v12  ;;  %v384_v12 = vld [vmem:[%s919_s4 + $0x8] sm:$0xff] }
  0x90   : > { %v293_v16 = vpop.xlane.xlu1 %292 }
  0x91   : > { %v299_v17 = vadd.f32 %v293_v16, %v283_v14  ;;  %v287_v18 = vpop.xlane.xlu0 %286 }
  0x92   : > { %v297_v19 = vadd.f32 %v287_v18, %v281_v15 }
  0x93   : > { %304 = vst.msk [vmem:[#allocation2 + $0x10] sm:$0xff] %vm268_vm0, %v299_v17 }
  0x94   : > { %302 = vst.msk [vmem:[#allocation2] sm:$0xff] %vm268_vm0, %v297_v19 }
  0x98   : > { %v296_v22 = vpop.xlane.xlu1 %295 }
  0x99   : > { %v300_v23 = vadd.f32 %v296_v22, %v284_v20  ;;  %v290_v24 = vpop.xlane.xlu0 %289 }
  0x9a   : > { %v311_v25 = vld [vmem:[#allocation2 + $0x10] sm:$0xff]  ;;  %v298_v26 = vadd.f32 %v290_v24, %v282_v21 }
  0x9b   : > { %305 = vst.msk [vmem:[#allocation2 + $0x18] sm:$0xff] %vm268_vm0, %v300_v23  ;;  %v315_v27 = vmul.f32 0.00390625, %v311_v25  ;;  %v309_v28 = vld [vmem:[#allocation2] sm:$0xff]  ;;  %v386_v23 = vld [vmem:[%s919_s4 + $0x18] sm:$0xff] }
  0x9c   : > { %303 = vst.msk [vmem:[#allocation2 + $0x8] sm:$0xff] %vm268_vm0, %v298_v26  ;;  %v313_v29 = vmul.f32 0.00390625, %v309_v28 }
  0x9d   : > { %333 = vperm.xlu0 %628, %v315_v27  }
  0x9e   : > { %323 = vperm.xlu2 %627, %v313_v29  }
  0xa2   : > { %v312_v30 = vld [vmem:[#allocation2 + $0x18] sm:$0xff] }
  0xa3   : > { %v316_v31 = vmul.f32 0.00390625, %v312_v30  ;;  %v310_v32 = vld [vmem:[#allocation2 + $0x8] sm:$0xff] }
  0xa4   : > { %v314_v33 = vmul.f32 0.00390625, %v310_v32 }
  0xa5   : > { %338 = vperm.xlu1 %629, %v316_v31  }
  0xa6   : > { %328 = vperm.xlu2 %627, %v314_v33  }
  0xf8   : > { %v324_v34 = vpop.permute.xlu2 %323 }
  0xf9   : > { %v341_v40 = vmul.f32 %v324_v34, %v317_v35 }
  0xfb   : > { %v346_v43 = vsel %vm345_vm1, %v341_v40, 0.0 }
 0x100   : > { %v329_v37 = vpop.permute.xlu2 %328 }
 0x101   : > { %v342_v41 = vmul.f32 %v329_v37, %v318_v36 }
 0x103   : > { %v347_v44 = vsel %vm345_vm1, %v342_v41, 0.0 }
 0x104   : > { %v348_v47 = vadd.f32 %v347_v44, %v346_v43 }
 0x10f   : > { %v334_v39 = vpop.permute.xlu0 %333 }
 0x110   : > { %v343_v42 = vmul.f32 %v334_v39, %v319_v38 }
 0x112   : > { %v349_v46 = vsel %vm345_vm1, %v343_v42, 0.0 }
 0x113   : > { %v350_v50 = vadd.f32 %v349_v46, %v348_v47 }
 0x117   : > { %v339_v48 = vpop.permute.xlu1 %338 }
 0x118   : > { %v344_v49 = vmul.f32 %v339_v48, %v320_v45 }
 0x11a   : > { %v351_v51 = vsel %vm345_vm1, %v344_v49, 0.0 }
 0x11b   : > { %v352_v52 = vadd.f32 %v351_v51, %v350_v50 }
 0x11d   : > { %v353_v53 = vrot.slane %v352_v52, 4 }
 0x11f   : > { %v354_v54 = vadd.f32 %v353_v53, %v352_v52 }
 0x121   : > { %v355_v55 = vrot.slane %v354_v54, 2 }
 0x123   : > { %v356_v56 = vadd.f32 %v355_v55, %v354_v54 }
 0x125   : > { %v357_v57 = vrot.slane %v356_v56, 1 }
 0x127   : > { %v358_v59 = vadd.f32 %v357_v57, %v356_v56 }
 0x129   : > { %v360_v60 = vadd.f32 %v359_v58, %v358_v59 }
 0x12b   : > { %v361_v61 = vmax.f32 %v360_v60, 0.0 }
 0x12d   : > { %v366_v1 = vperm.slane %v361_v61, 0 }
 0x12f   : > { %v369_v2 = vmul.f32 %v366_v1, %v364_v62  ;;  %v368_v3 = vmul.f32 %v366_v1, %v363_v63  ;;  %v367_v4 = vmul.f32 %v366_v1, %v362_v0  ;;  %v370_v9 = vmul.f32 %v366_v1, %v365_v8 }
 0x131   : > { %v377_v5 = vsel %vm345_vm1, %v369_v2, 0.0  ;;  %v374_v6 = vsel %vm345_vm1, %v368_v3, 0.0  ;;  %v371_v7 = vsel %vm345_vm1, %v367_v4, 0.0  ;;  %v380_v10 = vsel %vm345_vm1, %v370_v9, 0.0 }
 0x132   : > { %378 = vadd.xlane.f32.xlu0 %v377_v5  ;;  %375 = vadd.xlane.f32.xlu1 %v374_v6 }
 0x133   : > { %372 = vadd.xlane.f32.xlu2 %v371_v7 }
 0x13b   : > { %381 = vadd.xlane.f32.xlu2 %v380_v10 }
 0x1a5   : > { %v379_v14 = vpop.xlane.xlu0 %378  ;;  %v376_v15 = vpop.xlane.xlu1 %375 }
 0x1a6   : > { %v389_v16 = vadd.f32 %v385_v11, %v379_v14  ;;  %v388_v17 = vadd.f32 %v384_v12, %v376_v15  ;;  %v373_v18 = vpop.xlane.xlu2 %372 }
 0x1a7   : > { %v387_v19 = vadd.f32 %v383_v13, %v373_v18 }
 0x1a8   : > { %v562_v20 = vmul.f32 -1.442695, %v389_v16  ;;  %v561_v21 = vmul.f32 -1.442695, %v388_v17 }
 0x1a9   : > { %v560_v22 = vmul.f32 -1.442695, %v387_v19 }
 0x1aa   : > { %630 = vpow2.f32 %v562_v20 }
 0x1ab   : > { %632 = vpow2.f32 %v561_v21 }
 0x1ac   : > { %634 = vpow2.f32 %v560_v22 }
 0x1ae   : > { %v382_v24 = vpop.xlane.xlu2 %381 }
 0x1af   : > { %v390_v25 = vadd.f32 %v386_v23, %v382_v24 }
 0x1b0   : > { %v631_v26 = vpop.eup %630 }
 0x1b1   : > { %v633_v27 = vpop.eup %632  ;;  %v405_v28 = vadd.f32 1.0, %v631_v26  ;;  %v563_v29 = vmul.f32 -1.442695, %v390_v25 }
 0x1b2   : > { %v635_v30 = vpop.eup %634  ;;  %v404_v31 = vadd.f32 1.0, %v633_v27 }
 0x1b3   : > { %636 = vrcp.f32 %v405_v28  ;;  %v403_v32 = vadd.f32 1.0, %v635_v30  ;;  %v446_v39 = vand.u32 2147483647, %v405_v28  ;;  %v448_v42 = vand.u32 2147483648, %v405_v28 }
 0x1b4   : > { %638 = vrcp.f32 %v404_v31  ;;  %v433_v44 = vand.u32 2147483648, %v404_v31  ;;  %vm442_vm3 = vweird.f32 %v405_v28  ;;  %v431_v48 = vand.u32 2147483647, %v404_v31 }
 0x1b5   : > { %640 = vpow2.f32 %v563_v29  ;;  %vm447_vm5 = vcmp.eq.f32.partialorder %v446_v39, 8.507059e+37  ;;  %vm427_vm6 = vweird.f32 %v404_v31  ;;  %v449_v51 = vor.u32 1.1754944e-38, %v448_v42 }
 0x1b6   : > { %642 = vrcp.f32 %v403_v32  ;;  %v434_v53 = vor.u32 1.1754944e-38, %v433_v44  ;;  %v418_v54 = vand.u32 2147483648, %v403_v32  ;;  %v416_v57 = vand.u32 2147483647, %v403_v32 }
 0x1b7   : > { %vm432_vm10 = vcmp.eq.f32.partialorder %v431_v48, 8.507059e+37  ;;  %vm412_vm11 = vweird.f32 %v403_v32 }
 0x1b8   : > { %v419_v63 = vor.u32 1.1754944e-38, %v418_v54  ;;  %vm417_vm13 = vcmp.eq.f32.partialorder %v416_v57, 8.507059e+37 }
 0x1b9   : > { %v637_v33 = vpop.eup %636 }
 0x1ba   : > { %v639_v34 = vpop.eup %638  ;;  %v438_v35 = vmul.f32 %v637_v33, %v405_v28  ;;  %vm443_vm2 = vweird.f32 %v637_v33 }
 0x1bb   : > { %v641_v36 = vpop.eup %640  ;;  %v423_v37 = vmul.f32 %v639_v34, %v404_v31  ;;  %vm428_vm4 = vweird.f32 %v639_v34  ;;  %vm444_vm7 = vmor %vm442_vm3, %vm443_vm2 }
 0x1bc   : > { %v439_v38 = vsub.f32 1.0, %v438_v35  ;;  %v406_v40 = vadd.f32 1.0, %v641_v36  ;;  %v643_v41 = vpop.eup %642  ;;  %vm429_vm8 = vmor %vm427_vm6, %vm428_vm4 }
 0x1bd   : > { %v424_v43 = vsub.f32 1.0, %v423_v37  ;;  %v408_v46 = vmul.f32 %v643_v41, %v403_v32  ;;  %vm413_vm9 = vweird.f32 %v643_v41 }
 0x1be   : > { %v440_v45 = vmul.f32 %v637_v33, %v439_v38  ;;  %644 = vrcp.f32 %v406_v40  ;;  %vm414_vm12 = vmor %vm412_vm11, %vm413_vm9  ;;  %v463_v4 = vand.u32 2147483648, %v406_v40  ;;  %v461_v6 = vand.u32 2147483647, %v406_v40 }
 0x1bf   : > { %v425_v47 = vmul.f32 %v639_v34, %v424_v43  ;;  %v409_v50 = vsub.f32 1.0, %v408_v46  ;;  %vm457_vm15 = vweird.f32 %v406_v40 }
 0x1c0   : > { %v441_v49 = vadd.f32 %v637_v33, %v440_v45  ;;  %v464_v8 = vor.u32 1.1754944e-38, %v463_v4  ;;  %vm462_vm2 = vcmp.eq.f32.partialorder %v461_v6, 8.507059e+37 }
 0x1c1   : > { %v426_v52 = vadd.f32 %v639_v34, %v425_v47  ;;  %v410_v56 = vmul.f32 %v643_v41, %v409_v50 }
 0x1c2   : > { %v445_v55 = vsel %vm444_vm7, %v637_v33, %v441_v49 }
 0x1c3   : > { %v450_v58 = vsel %vm447_vm5, %v449_v51, %v445_v55  ;;  %v430_v59 = vsel %vm429_vm8, %v639_v34, %v426_v52  ;;  %v411_v62 = vadd.f32 %v643_v41, %v410_v56 }
 0x1c4   : > { %v645_v60 = vpop.eup %644  ;;  %469 = vst.msk [vmem:[%s887_s15 + $0x10] sm:$0xff] %vm268_vm0, %v450_v58  ;;  %v435_v61 = vsel %vm432_vm10, %v434_v53, %v430_v59 }
 0x1c5   : > { %468 = vst.msk [vmem:[%s887_s15 + $0x8] sm:$0xff] %vm268_vm0, %v435_v61  ;;  %v453_v0 = vmul.f32 %v645_v60, %v406_v40  ;;  %v415_v1 = vsel %vm414_vm12, %v643_v41, %v411_v62  ;;  %vm458_vm14 = vweird.f32 %v645_v60 }
 0x1c6   : > { %v420_v2 = vsel %vm417_vm13, %v419_v63, %v415_v1  ;;  %vm459_vm1 = vmor %vm457_vm15, %vm458_vm14 }
 0x1c7   : > { %v454_v3 = vsub.f32 1.0, %v453_v0  ;;  %467 = vst.msk [vmem:[%s887_s15] sm:$0xff] %vm268_vm0, %v420_v2 }
 0x1c9   : > { %v455_v5 = vmul.f32 %v645_v60, %v454_v3 }
 0x1cb   : > { %v456_v7 = vadd.f32 %v645_v60, %v455_v5 }
 0x1cd   : > { %v460_v9 = vsel %vm459_vm1, %v645_v60, %v456_v7 }
 0x1ce   : > { %v465_v10 = vsel %vm462_vm2, %v464_v8, %v460_v9 }
 0x1cf   : > { %470 = vst.msk [vmem:[%s887_s15 + $0x18] sm:$0xff] %vm268_vm0, %v465_v10 }
 0x1d0 PF: > { %s18_s23 = sadd.s32 1, %s726_s23   ;;  %s923_s18 = smov %s710_s19 }
 0x1d1   : > { %p15_p0 = scmp.ge.s32.totalorder %s18_s23, 4   ;;  %s924_s19 = smov %s714_s20 }
 0x1d2   : > { %s925_s20 = smov %s811_s30  ;;  %s926_s21 = smov %s722_s22 }
 0x1d3   : > { %s927_s22 = smov %s929_s25  ;;  %17 = sbr.rel (!%p15_p0) target bundleno = 4 (0x4), region = 88 }
 0x1d8   :  { %492 = vsyncpa [#allocation4], 1 }
 0x1d9   :  { %494 = vsyncpa [#allocation4 + $0x1], 1 }

</bundles_post_ra>
